<compile_context>
chip_gen: v6e
topology: v6e:2x2x1
jax: 0.10.0
libtpu: 0.0.40
codegen_flags: <defaults>
</compile_context>

<pallas_src>
import functools

import jax
import jax.numpy as jnp
from jax.experimental import pallas as pl
from jax.experimental.pallas import tpu as pltpu


def _round_up(x, m):
    return ((x + m - 1) // m) * m


@functools.lru_cache(maxsize=None)
def _vmem_budget_bytes():
    """Per-core scoped-VMEM budget with headroom (generation-aware)."""
    cap = 64 << 20  # conservative default = v7x per-TensorCore VMEM
    try:
        info = pltpu.get_tpu_info()
        cap = int(getattr(info, "vmem_capacity_bytes", cap))
    except Exception:
        pass
    # Leave headroom for compiler temporaries / semaphores; never request more than
    # 112 MiB even on 128 MiB parts (v5e/v6e), never less than 24 MiB.
    return int(min(max(cap - (8 << 20), 24 << 20), 112 << 20))


def _estimate_vmem_bytes(tm, tk, d_model, x_it, w_it, o_it, num_k):
    """Live VMEM for one grid step: double-buffered IO + weights, h, accumulator."""
    weights = (d_model * tk + tk * d_model + tk + d_model) * w_it   # W1, W2, b1, b2
    io = tm * d_model * (x_it + o_it)                               # x tile + out tile
    h = tm * tk * (4 + w_it)          # f32 intermediate + its cast copy fed to MXU #2
    acc = 0 if num_k == 1 else tm * d_model * 4
    return 2 * (weights + io) + h + acc


def _choose_tm(rows, block_rows):
    """MXU-friendly row tile; >= 2 row tiles when rows allow (2-TC v7x megacore)."""
    if rows <= 256:
        return _round_up(rows, 8)          # single small tile, minimal padding
    block_rows = max(256, _round_up(block_rows, 256))
    half = (rows + 1) // 2                 # keep at least two tiles on the rows axis
    return min(block_rows, _round_up(half, 128))


def _ffn_kernel(x_ref, w1_ref, b1_ref, w2_ref, b2_ref, o_ref, *scratch, num_k):
    """One (row-tile, d_ffn-chunk) step of relu(x@W1+b1) @ W2 + b2."""
    # First linear on this d_ffn chunk (native-dtype MXU operands, f32 accumulate).
    h = jnp.dot(x_ref[...], w1_ref[...], preferred_element_type=jnp.float32)
    h = jnp.maximum(h + b1_ref[...].astype(jnp.float32), 0.0)
    # nn.Dropout in eval mode == identity.
    # TODO(synk): training-mode stochastic dropout (pltpu.prng_*) not implemented.

    # Second linear partial sum; cast h once to the weight dtype for the MXU.
    part = jnp.dot(h.astype(w2_ref.dtype), w2_ref[...],
                   preferred_element_type=jnp.float32)

    if num_k == 1:
        # Weight-resident fast path: single reduction step, no scratch round-trip,
        # single cast at the lane-dense (tm, d_model) store.
        o_ref[...] = (part + b2_ref[...].astype(jnp.float32)).astype(o_ref.dtype)
    else:
        acc_ref = scratch[0]
        k = pl.program_id(1)

        @pl.when(k == 0)
        def _():
            acc_ref[...] = jnp.zeros_like(acc_ref)

        acc_ref[...] += part

        @pl.when(k == num_k - 1)
        def _():
            o_ref[...] = (acc_ref[...] + b2_ref[...].astype(jnp.float32)
                          ).astype(o_ref.dtype)


@functools.partial(jax.jit, static_argnums=(5, 6))
def _ffn_impl(x, w1, b1, w2, b2, block_rows, block_ffn):
    batch, seq, d_model = x.shape
    d_ffn = w1.shape[1]
    rows = batch * seq
    x2d = x.reshape(rows, d_model)

    x_it = x.dtype.itemsize
    w_it = w1.dtype.itemsize
    o_it = x.dtype.itemsize
    budget = _vmem_budget_bytes()

    # ---- Row tiling -------------------------------------------------------
    tm = _choose_tm(rows, block_rows)
    rows_p = _round_up(rows, tm)

    # ---- Hidden (d_ffn) tiling ---------------------------------------------
    # Preferred: weights fully VMEM-resident (single reduction step) -> W1/W2 are
    # fetched from HBM once for the whole kernel.
    if _estimate_vmem_bytes(tm, d_ffn, d_model, x_it, w_it, o_it, 1) <= budget:
        tk, d_ffn_p, num_k = d_ffn, d_ffn, 1
    else:
        # Streaming fallback: chunk the reduction axis (last grid axis), shrink
        # tiles until the working set fits the per-core budget.
        tk = min(_round_up(min(block_ffn, d_ffn), 256), _round_up(d_ffn, 256))
        while tk > 256 and _estimate_vmem_bytes(
                tm, tk, d_model, x_it, w_it, o_it, 2) > budget:
            tk = _round_up(tk // 2, 256)
        while tm > 256 and _estimate_vmem_bytes(
                tm, tk, d_model, x_it, w_it, o_it, 2) > budget:
            tm = _round_up(tm // 2, 128)
            rows_p = _round_up(rows, tm)
        d_ffn_p = _round_up(d_ffn, tk)
        num_k = d_ffn_p // tk

    # ---- Zero padding (exact: relu(0)=0, padded hidden units see zero W2 rows).
    if rows_p != rows:
        x2d = jnp.pad(x2d, ((0, rows_p - rows), (0, 0)))
    if d_ffn_p != d_ffn:
        pad = d_ffn_p - d_ffn
        w1 = jnp.pad(w1, ((0, 0), (0, pad)))
        b1 = jnp.pad(b1, ((0, 0), (0, pad)))
        w2 = jnp.pad(w2, ((0, pad), (0, 0)))

    grid = (rows_p // tm, num_k)
    n_row_tiles = grid[0]

    # Advisory cost: in streaming mode W1/W2 are re-read once per row tile.
    w_bytes = (w1.size * w1.dtype.itemsize + b1.size * b1.dtype.itemsize
               + w2.size * w2.dtype.itemsize + b2.size * b2.dtype.itemsize)
    w_passes = 1 if num_k == 1 else n_row_tiles
    cost = pl.CostEstimate(
        flops=4 * rows_p * d_model * d_ffn_p,
        transcendentals=0,
        bytes_accessed=int(rows_p * d_model * (x_it + o_it) + w_passes * w_bytes),
    )

    kernel = functools.partial(_ffn_kernel, num_k=num_k)
    scratch_shapes = ([] if num_k == 1
                      else [pltpu.VMEM((tm, d_model), jnp.float32)])

    # NOTE: if xprof shows exposed W1/W2 chunk DMA in streaming mode (e.g. v7x),
    # add pipeline_mode=pl.Buffered(3) to the two weight BlockSpecs below.
    out2d = pl.pallas_call(
        kernel,
        out_shape=jax.ShapeDtypeStruct((rows_p, d_model), x.dtype),
        grid_spec=pltpu.PrefetchScalarGridSpec(
            num_scalar_prefetch=0,
            grid=grid,
            in_specs=[
                pl.BlockSpec((tm, d_model), lambda i, k: (i, 0)),   # x tile
                pl.BlockSpec((d_model, tk), lambda i, k: (0, k)),   # W1 (chunk or full)
                pl.BlockSpec((1, tk), lambda i, k: (0, k)),         # b1
                pl.BlockSpec((tk, d_model), lambda i, k: (k, 0)),   # W2 (chunk or full)
                pl.BlockSpec((1, d_model), lambda i, k: (0, 0)),    # b2
            ],
            out_specs=pl.BlockSpec((tm, d_model), lambda i, k: (i, 0)),
            scratch_shapes=scratch_shapes,
        ),
        compiler_params=pltpu.CompilerParams(
            dimension_semantics=("parallel", "arbitrary"),
            vmem_limit_bytes=budget,
        ),
        cost_estimate=cost,
    )(x2d, w1, b1, w2, b2)

    return out2d[:rows].reshape(batch, seq, d_model)


def feed_forward_network(x, w1, b1, w2, b2, *, block_rows=512, block_ffn=1024):
    """Applies relu(x @ W1 + b1) @ W2 + b2 to x of shape (batch, seq, d_model)."""
    if b1.ndim == 1:          # accept PyTorch-style 1-D biases
        b1 = b1.reshape(1, -1)
    if b2.ndim == 1:
        b2 = b2.reshape(1, -1)
    return _ffn_impl(x, w1, b1, w2, b2, int(block_rows), int(block_ffn))


def init_ffn_params(key, d_model, d_ffn_hidden, dtype=jnp.float32):
    """Deterministic init matching nn.Linear's U(-1/sqrt(fan_in), 1/sqrt(fan_in)).

    For production on v5e/v6e/v7x prefer dtype=jnp.bfloat16 (halves weight-streaming
    bytes and doubles effective MXU rate); the kernel handles it natively.
    """
    k1, k2, k3, k4 = jax.random.split(key, 4)
    bound1 = 1.0 / jnp.sqrt(d_model)
    bound2 = 1.0 / jnp.sqrt(d_ffn_hidden)
    # Stored as (in_features, out_features) -> forward is x @ W + b.
    w1 = jax.random.uniform(k1, (d_model, d_ffn_hidden), dtype,
                            minval=-bound1, maxval=bound1)
    b1 = jax.random.uniform(k2, (1, d_ffn_hidden), dtype,
                            minval=-bound1, maxval=bound1)
    w2 = jax.random.uniform(k3, (d_ffn_hidden, d_model), dtype,
                            minval=-bound2, maxval=bound2)
    b2 = jax.random.uniform(k4, (1, d_model), dtype,
                            minval=-bound2, maxval=bound2)
    return w1, b1, w2, b2


if __name__ == "__main__":
    batch, seq, d_model, d_ffn_hidden = 2, 8, 32, 64

    key = jax.random.PRNGKey(0)
    k_x, k_p = jax.random.split(key)
    x = jax.random.normal(k_x, (batch, seq, d_model), jnp.float32)
    w1, b1, w2, b2 = init_ffn_params(k_p, d_model, d_ffn_hidden)

    # f32 weights: exact-tolerance check against pure-JAX reference.
    out = feed_forward_network(x, w1, b1, w2, b2)
    out = jax.block_until_ready(out)
    ref = jnp.maximum(x.reshape(-1, d_model) @ w1 + b1, 0.0) @ w2 + b2
    ref = ref.reshape(batch, seq, d_model)
    assert out.shape == (batch, seq, d_model)
    assert jnp.allclose(out, ref, atol=1e-5, rtol=1e-5)

    # bf16 weights (perf-review recommendation): mixed-precision path, looser tol.
    w1b, b1b = w1.astype(jnp.bfloat16), b1.astype(jnp.bfloat16)
    w2b, b2b = w2.astype(jnp.bfloat16), b2.astype(jnp.bfloat16)
    out_bf = jax.block_until_ready(feed_forward_network(x, w1b, b1b, w2b, b2b))
    ref_bf = (jnp.maximum(x.reshape(-1, d_model) @ w1b.astype(jnp.float32)
                          + b1b.astype(jnp.float32), 0.0)
              @ w2b.astype(jnp.float32) + b2b.astype(jnp.float32))
    ref_bf = ref_bf.reshape(batch, seq, d_model)
    assert jnp.allclose(out_bf, ref_bf, atol=5e-2, rtol=5e-2)

    print("KERNEL_OK")
</pallas_src>

<mosaic_0001>
module attributes {stable_mosaic.version = 11 : i64} {
  func.func @_ffn_kernel(%arg0: i32, %arg1: i32, %arg2: memref<16x32xf32, #tpu.memory_space<vmem>>, %arg3: memref<32x64xf32, #tpu.memory_space<vmem>>, %arg4: memref<1x64xf32, #tpu.memory_space<vmem>>, %arg5: memref<64x32xf32, #tpu.memory_space<vmem>>, %arg6: memref<1x32xf32, #tpu.memory_space<vmem>>, %arg7: memref<16x32xf32, #tpu.memory_space<vmem>>) attributes {dimension_semantics = [#tpu.dimension_semantics<parallel>, #tpu.dimension_semantics<arbitrary>], iteration_bounds = array<i64: 1, 1>, scalar_prefetch = 0 : i64, scratch_operands = 0 : i64, tpu.core_type = #tpu.core_type<tc>, window_params = [{transform_indices = @transform_0, window_bounds = array<i64: 16, 32>}, {transform_indices = @transform_1, window_bounds = array<i64: 32, 64>}, {transform_indices = @transform_2, window_bounds = array<i64: 1, 64>}, {transform_indices = @transform_3, window_bounds = array<i64: 64, 32>}, {pipeline_mode = #tpu.pipeline_mode<synchronous>, transform_indices = @transform_4, window_bounds = array<i64: 1, 32>}, {transform_indices = @transform_5, window_bounds = array<i64: 16, 32>}]} {
    %c0 = arith.constant 0 : index
    %c0_0 = arith.constant 0 : index
    %0 = vector.load %arg2[%c0, %c0_0] : memref<16x32xf32, #tpu.memory_space<vmem>>, vector<16x32xf32>
    %c0_1 = arith.constant 0 : index
    %c0_2 = arith.constant 0 : index
    %1 = vector.load %arg3[%c0_1, %c0_2] : memref<32x64xf32, #tpu.memory_space<vmem>>, vector<32x64xf32>
    %cst = arith.constant dense<0.000000e+00> : vector<16x64xf32>
    %2 = tpu.matmul %0, %1, %cst {dimension_numbers = #tpu.dot_dimension_numbers<[1], [0], [0], [1], [0, 0, 1, 1], [], []>} : vector<16x32xf32>, vector<32x64xf32>, vector<16x64xf32> -> vector<16x64xf32>
    %c0_3 = arith.constant 0 : index
    %c0_4 = arith.constant 0 : index
    %3 = vector.load %arg4[%c0_3, %c0_4] : memref<1x64xf32, #tpu.memory_space<vmem>>, vector<1x64xf32>
    %4 = vector.broadcast %3 : vector<1x64xf32> to vector<16x64xf32>
    %5 = arith.addf %2, %4 : vector<16x64xf32>
    %cst_5 = arith.constant 0.000000e+00 : f32
    %6 = vector.broadcast %cst_5 : f32 to vector<16x64xf32>
    %7 = arith.maximumf %5, %6 : vector<16x64xf32>
    %c0_6 = arith.constant 0 : index
    %c0_7 = arith.constant 0 : index
    %8 = vector.load %arg5[%c0_6, %c0_7] : memref<64x32xf32, #tpu.memory_space<vmem>>, vector<64x32xf32>
    %cst_8 = arith.constant dense<0.000000e+00> : vector<16x32xf32>
    %9 = tpu.matmul %7, %8, %cst_8 {dimension_numbers = #tpu.dot_dimension_numbers<[1], [0], [0], [1], [0, 0, 1, 1], [], []>} : vector<16x64xf32>, vector<64x32xf32>, vector<16x32xf32> -> vector<16x32xf32>
    %c0_9 = arith.constant 0 : index
    %c0_10 = arith.constant 0 : index
    %10 = vector.load %arg6[%c0_9, %c0_10] : memref<1x32xf32, #tpu.memory_space<vmem>>, vector<1x32xf32>
    %11 = vector.broadcast %10 : vector<1x32xf32> to vector<16x32xf32>
    %12 = arith.addf %9, %11 : vector<16x32xf32>
    %c0_11 = arith.constant 0 : index
    %c0_12 = arith.constant 0 : index
    %13 = vector.load %arg7[%c0_11, %c0_12] : memref<16x32xf32, #tpu.memory_space<vmem>>, vector<16x32xf32>
    tpu.vector_store %arg7[%c0_11, %c0_12], %12 {strides = array<i32>} : memref<16x32xf32, #tpu.memory_space<vmem>>, vector<16x32xf32>,
    return
  }
  func.func @transform_0(%arg0: i32, %arg1: i32) -> (i32, i32) {
    %c0_i32 = arith.constant 0 : i32
    %c0_i32_0 = arith.constant 0 : i32
    return %arg0, %c0_i32 : i32, i32
  }
  func.func @transform_1(%arg0: i32, %arg1: i32) -> (i32, i32) {
    %c0_i32 = arith.constant 0 : i32
    %c0_i32_0 = arith.constant 0 : i32
    return %c0_i32, %arg1 : i32, i32
  }
  func.func @transform_2(%arg0: i32, %arg1: i32) -> (i32, i32) {
    %c0_i32 = arith.constant 0 : i32
    %c0_i32_0 = arith.constant 0 : i32
    return %c0_i32, %arg1 : i32, i32
  }
  func.func @transform_3(%arg0: i32, %arg1: i32) -> (i32, i32) {
    %c0_i32 = arith.constant 0 : i32
    %c0_i32_0 = arith.constant 0 : i32
    return %arg1, %c0_i32 : i32, i32
  }
  func.func @transform_4(%arg0: i32, %arg1: i32) -> (i32, i32) {
    %c0_i32 = arith.constant 0 : i32
    %c0_i32_0 = arith.constant 0 : i32
    %c0_i32_1 = arith.constant 0 : i32
    return %c0_i32, %c0_i32_0 : i32, i32
  }
  func.func @transform_5(%arg0: i32, %arg1: i32) -> (i32, i32) {
    %c0_i32 = arith.constant 0 : i32
    %c0_i32_0 = arith.constant 0 : i32
    return %arg0, %c0_i32 : i32, i32
  }
}

</mosaic_0001>

<bundles_post_ra>
// kernel: _ffn_impl.1
= control target key start
LH: loop header
LB: loop body
LE: loop exit
PB: predicated region body
PF: predicated region fallthrough
CT: control target
= control target key end

     0   :  { %vm34_vm0 = vcmask 261120   ;;  %s398_s0 = inlined_call_operand.vmem [shape: f32[16,32], index: 0, kind: input, shape index: {}]   ;;  %s399_s1 = inlined_call_operand.vmem [shape: f32[32,64], index: 1, kind: input, shape index: {}]   ;;  %s400_s2 = inlined_call_operand.vmem [shape: f32[1,64], index: 2, kind: input, shape index: {}]   ;;  %s401_s3 = inlined_call_operand.vmem [shape: f32[64,32], index: 3, kind: input, shape index: {}]   ;;  %s402_s4 = inlined_call_operand.vmem [shape: f32[1,32], index: 4, kind: input, shape index: {}]   ;;  %s403_s5 = inlined_call_operand.hbm [shape: f32[16,32], index: 5, kind: output, shape index: {}]  }
   0x1   :  { %v26_v0 = vld [vmem:[%s399_s1 + $0x18] sm:$0xff]  ;;  %v25_v1 = vld [vmem:[%s399_s1 + $0x10] sm:$0xff]  ;;  %v21_v2 = vld [vmem:[%s398_s0] sm:$0xff] }
   0x2   :  { %255 = vmatprep.subr.mxu0 %v26_v0  ;;  %v24_v3 = vld [vmem:[%s399_s1 + $0x8] sm:$0xff]  ;;  %263 = vmatprep.mubr.msk.f32.mxu0 %vm34_vm0, %v21_v2  ;;  %v125_v4 = vld [vmem:[%s401_s3 + $0x38] sm:$0xff]  ;;  %v124_v5 = vld [vmem:[%s401_s3 + $0x30] sm:$0xff] }
   0x3   :  { %256 = vmatpush3.msra.mxu0 %v26_v0  ;;  %266 = vmatprep.subr.mxu1 %v125_v4 }
   0x4   :  { %257 = vmatprep.subr.mxu0 %v25_v1 }
   0x5   :  { %10 = vsyncpa [#allocation3], 0  ;;  %258 = vmatpush3.msra.mxu0 %v25_v1  ;;  %v23_v6 = vld [vmem:[%s399_s1] sm:$0xff]  ;;  %267 = vmatpush3.msra.mxu1 %v125_v4  ;;  %v123_v7 = vld [vmem:[%s401_s3 + $0x28] sm:$0xff]  ;;  %vm133_vm1 = vcmask 523264  }
   0x6   :  { %259 = vmatprep.subr.mxu0 %v24_v3  ;;  %268 = vmatprep.subr.mxu1 %v124_v5  ;;  %v22_v8 = vld [vmem:[%s398_s0 + $0x8] sm:$0xff]  ;;  %v122_v9 = vld [vmem:[%s401_s3 + $0x20] sm:$0xff]  ;;  %v121_v10 = vld [vmem:[%s401_s3 + $0x18] sm:$0xff] }
   0x7   :  { %260 = vmatpush3.msra.mxu0 %v24_v3  ;;  %269 = vmatpush3.msra.mxu1 %v124_v5  ;;  %v120_v11 = vld [vmem:[%s401_s3 + $0x10] sm:$0xff]  ;;  %v119_v12 = vld [vmem:[%s401_s3 + $0x8] sm:$0xff]  ;;  %v118_v13 = vld [vmem:[%s401_s3] sm:$0xff]  ;;  %s310_s3 = smov [#allocation2]  }
   0x8   :  { %261 = vmatprep.subr.mxu0 %v23_v6  ;;  %270 = vmatprep.subr.mxu1 %v123_v7  ;;  %v233_v14 = vld [vmem:[%s400_s2] ss:$0 sm:$0xff]  ;;  %s222_s23 = sshll.u32 %s310_s3, 4  ;;  %s223_s23 = int_to_ptr.vmem [resolvable:$true] %s222_s23 }
   0x9   :  { %262 = vmatpush3.msra.mxu0 %v23_v6  ;;  %271 = vmatpush3.msra.mxu1 %v123_v7  ;;  %v236_v21 = vld [vmem:[%s402_s4] ss:$0 sm:$0xff]  ;;  %s288_s2 = scalar_lea.vmem %s223_s23, 256  ;;  %p293_p1 = scmp.lt.s32.totalorder %s223_s23, %s223_s23 }
   0xa   :  { %264 = vmatmul.mubr.msk.f32.vlgmr.msra.gmra.mxu0 %vm34_vm0, %v22_v8  ;;  %272 = vmatprep.subr.mxu1 %v122_v9  ;;  %p289_p0 = scmp.ne.s32.totalorder %s223_s23, %s288_s2  ;;  %p294_p2 = scmp.lt.s32.totalorder %s288_s2, %s288_s2 }
   0xb   :  { %273 = vmatpush3.msra.mxu1 %v122_v9 }
   0xc   :  { %274 = vmatprep.subr.mxu1 %v121_v10  ;;  %p295_p3 = por %p294_p2, %p293_p1 }
   0xd   :  { %275 = vmatpush3.msra.mxu1 %v121_v10 }
   0xe   :  { %276 = vmatprep.subr.mxu1 %v120_v11  ;;  %p296_p4 = pnand %p295_p3, %p289_p0 }
   0xf   :  { %277 = vmatpush3.msra.mxu1 %v120_v11 }
  0x10   :  { %278 = vmatprep.subr.mxu1 %v119_v12 }
  0x11   :  { %279 = vmatpush3.msra.mxu1 %v119_v12 }
  0x12   :  { %280 = vmatprep.subr.mxu1 %v118_v13 }
  0x13   :  { %281 = vmatpush3.msra.mxu1 %v118_v13 }
  0xca   :  { %v265_v15 = vpop.f32.mrf.mxu0 }
  0xcb   :  { %v113_v16 = vadd.f32 %v265_v15, %v233_v14 }
  0xcc   :  { %v107_v17 = vpop.f32.mrf.mxu0 }
  0xcd   :  { %v108_v18 = vadd.f32 %v233_v14, %v107_v17  ;;  %v117_v20 = vmax.f32 %v113_v16, 0.0 }
  0xcf   :  { %v116_v19 = vmax.f32 %v108_v18, 0.0 }
  0xd1   :  { %282 = vmatprep.mubr.msk.f32.mxu1 %vm133_vm1, %v116_v19 }
  0xd2   :  { %283 = vmatmul.mubr.msk.f32.vlgmr.msra.gmra.mxu1 %vm133_vm1, %v117_v20 }
 0x192   :  { %v284_v22 = vpop.f32.mrf.mxu1 }
 0x193   :  { %v212_v23 = vadd.f32 %v284_v22, %v236_v21 }
 0x194   :  { %v206_v24 = vpop.f32.mrf.mxu1 }
 0x195   :  { %216 = vst.msk [vmem:[#allocation2 + $0x8] sm:$0xff] %vm34_vm0, %v212_v23  ;;  %v207_v25 = vadd.f32 %v236_v21, %v206_v24 }
 0x197   :  { %215 = vst.msk [vmem:[#allocation2] sm:$0xff] %vm34_vm0, %v207_v25 }
 0x198   :  { %299 = shalt.err (!%p296_p4)
}
 0x199   :  { %s311_s24 = smov 128   ;;  %s312_s4 = smov 8  }
 0x19a   :  { %228 = dma.vmem_to_hbm [thread:$0]  %s223_s23, 256, %s403_s5, [#allocation3], %s311_s24, %s311_s24, %s312_s4  }
 0x19b   :  { %308 = dma.done.wait [#allocation3], 256  }
 0x19c   :  { %309 = vsyncadd [#allocation3], 4294967040 }
 0x19d   :  { %232 = vsyncpa [#allocation3], 1 }

</bundles_post_ra>
